<compile_context>
chip_gen: v5e
topology: v5e:2x2
jax: 0.10.0
libtpu: 0.0.40
codegen_flags: <defaults>
</compile_context>

<pallas_src>
import functools

import jax
import jax.numpy as jnp
from jax.experimental import pallas as pl
from jax.experimental.pallas import tpu as pltpu

OBS_DIM = 16
ACTION_DIM = 4
HIDDEN_DIMS = (32, 32)
LOGVAR_MIN = -10.0
LOGVAR_MAX = 2.0
LN_EPS = 1e-5

LANE = 128             # batch tiles are lane-dense (multiple of 128)
MAX_BATCH_TILE = 16384  # per-step VMEM ~ a few MiB; DMA time >> 0.35us step overhead


def _round_up(n, m):
    return ((n + m - 1) // m) * m


def _cdiv(a, b):
    return (a + b - 1) // b


def _pick_batch_tile(batch):
    # Largest lane-dense tile that (a) stays under MAX_BATCH_TILE and
    # (b) yields >= 2 grid steps when the batch allows it, so the "parallel"
    # batch axis can be split across v7x's two TensorCores.
    bp128 = _round_up(max(batch, 1), LANE)
    tb = _round_up(_cdiv(bp128, 2), LANE)
    return max(LANE, min(MAX_BATCH_TILE, tb))


def actor_kernel(x_ref, w0T_ref, b0_ref, ln_g_ref, ln_b_ref,
                 w1T_ref, b1_ref, w2T_ref, b2_ref, outT_ref):
    # x block arrives batch-major (TB, OBS).  The first matmul contracts the
    # obs axis of both operands, producing feature-major (H0, TB) directly —
    # batch on the lane axis for all subsequent VPU/EUP work.
    h = jax.lax.dot_general(
        w0T_ref[...], x_ref[...],
        dimension_numbers=(((1,), (1,)), ((), ())),
        preferred_element_type=jnp.float32) + b0_ref[...]

    # LayerNorm over the feature axis (axis 0); biased variance like nn.LayerNorm.
    mean = jnp.mean(h, axis=0, keepdims=True)
    var_h = jnp.mean(jnp.square(h - mean), axis=0, keepdims=True)
    h = (h - mean) * jax.lax.rsqrt(var_h + LN_EPS)
    h = h * ln_g_ref[...] + ln_b_ref[...]

    # ReLU
    h = jnp.maximum(h, 0.0)

    # Linear(h0, h1): (H1, TB)
    h = jnp.dot(w1T_ref[...], h, preferred_element_type=jnp.float32) + b1_ref[...]

    # ReLU
    h = jnp.maximum(h, 0.0)

    # Linear(h1, 2*action_dim): (2A, TB)
    out = jnp.dot(w2T_ref[...], h, preferred_element_type=jnp.float32) + b2_ref[...]

    # Rows [0, A) are mu (pass-through); rows [A, 2A) are logvar -> var.
    # Row mask avoids sub-(8,128) sublane slicing; the extra tanh/exp on the
    # mu rows runs on the otherwise-idle EUP (free filler, per review).
    row = jax.lax.broadcasted_iota(jnp.int32, out.shape, 0)
    lv = jnp.tanh(out)
    lv = LOGVAR_MIN + 0.5 * (LOGVAR_MAX - LOGVAR_MIN) * (lv + 1.0)
    outT_ref[...] = jnp.where(row >= ACTION_DIM, jnp.exp(lv), out)


@functools.partial(jax.jit, static_argnames=("batch_tile", "feature_major_out"))
def actor_forward(x, params, batch_tile=None, feature_major_out=False):
    B = x.shape[0]
    A = ACTION_DIM

    if batch_tile is None:
        TB = _pick_batch_tile(B)
    else:
        TB = _round_up(batch_tile, LANE)
    Bp = _round_up(B, TB)

    # Batch-major f32 x, padded rows are zeros (bias-only, bounded, sliced off).
    xp = x.astype(jnp.float32)
    if Bp != B:
        xp = jnp.pad(xp, ((0, Bp - B), (0, 0)))

    # Weights transposed to (out_features, in_features); biases / LN params as
    # (features, 1) columns.  All tiny (few KiB) and pinned to block (0, 0).
    w0T = params["w0"].T.astype(jnp.float32)            # (H0, OBS)
    w1T = params["w1"].T.astype(jnp.float32)            # (H1, H0)
    w2T = params["w2"].T.astype(jnp.float32)            # (2A, H1)
    b0 = params["b0"].reshape(-1, 1).astype(jnp.float32)
    b1 = params["b1"].reshape(-1, 1).astype(jnp.float32)
    b2 = params["b2"].reshape(-1, 1).astype(jnp.float32)
    ln_g = params["ln_g"].reshape(-1, 1).astype(jnp.float32)
    ln_b = params["ln_b"].reshape(-1, 1).astype(jnp.float32)

    grid = (Bp // TB,)
    pinned = lambda arr: pl.BlockSpec(arr.shape, lambda i: (0, 0))

    outT = pl.pallas_call(
        actor_kernel,
        out_shape=jax.ShapeDtypeStruct((2 * A, Bp), jnp.float32),
        grid=grid,
        in_specs=[
            pl.BlockSpec((TB, OBS_DIM), lambda i: (i, 0)),   # batch-major x tile
            pinned(w0T), pinned(b0), pinned(ln_g), pinned(ln_b),
            pinned(w1T), pinned(b1), pinned(w2T), pinned(b2),
        ],
        out_specs=pl.BlockSpec((2 * A, TB), lambda i: (0, i)),  # lane-dense slab
        compiler_params=pltpu.CompilerParams(
            dimension_semantics=("parallel",),     # megacore split on v7x
            vmem_limit_bytes=32 * 1024 * 1024,
        ),
    )(xp, w0T, b0, ln_g, ln_b, w1T, b1, w2T, b2)

    mu_fm = outT[:A, :B]     # (A, B) feature-major
    var_fm = outT[A:, :B]
    if feature_major_out:
        # Fast path: no post-kernel de-transpose (consumers accept (A, B)).
        return mu_fm, var_fm
    # Module-faithful (B, A) layout (costs one XLA transpose pass).
    return mu_fm.T, var_fm.T


def init_params(key):
    # Deterministic synthetic init (shapes match the PyTorch module's __init__).
    ks = jax.random.split(key, 6)
    h0, h1 = HIDDEN_DIMS
    params = {
        # Linear weights stored (in, out) == PyTorch weight.T
        "w0": jax.random.normal(ks[0], (OBS_DIM, h0), jnp.float32) * 0.1,
        "b0": jax.random.normal(ks[1], (1, h0), jnp.float32) * 0.01,
        "ln_g": jnp.ones((1, h0), jnp.float32),
        "ln_b": jnp.zeros((1, h0), jnp.float32),
        "w1": jax.random.normal(ks[2], (h0, h1), jnp.float32) * 0.1,
        "b1": jax.random.normal(ks[3], (1, h1), jnp.float32) * 0.01,
        "w2": jax.random.normal(ks[4], (h1, 2 * ACTION_DIM), jnp.float32) * 0.1,
        "b2": jax.random.normal(ks[5], (1, 2 * ACTION_DIM), jnp.float32) * 0.01,
    }
    return params


def actor_ref(x, p):
    # Pure-JAX reference for correctness check (batch-major, f32).
    h = x @ p["w0"] + p["b0"]
    mean = jnp.mean(h, axis=-1, keepdims=True)
    var_h = jnp.mean((h - mean) ** 2, axis=-1, keepdims=True)
    h = (h - mean) / jnp.sqrt(var_h + LN_EPS) * p["ln_g"] + p["ln_b"]
    h = jnp.maximum(h, 0.0)
    h = jnp.maximum(h @ p["w1"] + p["b1"], 0.0)
    out = h @ p["w2"] + p["b2"]
    mu, logvar = out[:, :ACTION_DIM], out[:, ACTION_DIM:]
    logvar = jnp.tanh(logvar)
    logvar = LOGVAR_MIN + 0.5 * (LOGVAR_MAX - LOGVAR_MIN) * (logvar + 1.0)
    return mu, jnp.exp(logvar)


if __name__ == "__main__":
    key = jax.random.PRNGKey(0)
    kx, kp = jax.random.split(key)
    params = init_params(kp)

    # Small-batch path (single block, grid=(1,)).
    batch = 8
    x = jax.random.normal(kx, (batch, OBS_DIM), jnp.float32)
    mu, var = actor_forward(x, params)
    jax.block_until_ready((mu, var))
    mu_r, var_r = actor_ref(x, params)
    assert mu.shape == (batch, ACTION_DIM) and var.shape == (batch, ACTION_DIM)
    assert jnp.allclose(mu, mu_r, atol=1e-4, rtol=1e-4)
    assert jnp.allclose(var, var_r, atol=1e-4, rtol=1e-4)

    # Feature-major fast path (no output de-transpose).
    mu_fm, var_fm = actor_forward(x, params, feature_major_out=True)
    jax.block_until_ready((mu_fm, var_fm))
    assert jnp.allclose(mu_fm.T, mu_r, atol=1e-4, rtol=1e-4)
    assert jnp.allclose(var_fm.T, var_r, atol=1e-4, rtol=1e-4)

    # Auto-tile path with >= 2 grid steps (B=300 -> TB=256, grid=(2,)).
    xb = jax.random.normal(kx, (300, OBS_DIM), jnp.float32)
    mub, varb = actor_forward(xb, params)
    jax.block_until_ready((mub, varb))
    mub_r, varb_r = actor_ref(xb, params)
    assert jnp.allclose(mub, mub_r, atol=1e-4, rtol=1e-4)
    assert jnp.allclose(varb, varb_r, atol=1e-4, rtol=1e-4)

    # Explicit-tile multi-step grid path (3 tiles of 128 rows).
    mub3, varb3 = actor_forward(xb, params, batch_tile=128)
    jax.block_until_ready((mub3, varb3))
    assert jnp.allclose(mub3, mub_r, atol=1e-4, rtol=1e-4)
    assert jnp.allclose(varb3, varb_r, atol=1e-4, rtol=1e-4)

    print("KERNEL_OK")
</pallas_src>

<mosaic_0001>
module attributes {stable_mosaic.version = 11 : i64} {
  func.func @actor_kernel(%arg0: i32, %arg1: memref<128x16xf32, #tpu.memory_space<vmem>>, %arg2: memref<32x16xf32, #tpu.memory_space<vmem>>, %arg3: memref<32x1xf32, #tpu.memory_space<vmem>>, %arg4: memref<32x1xf32, #tpu.memory_space<vmem>>, %arg5: memref<32x1xf32, #tpu.memory_space<vmem>>, %arg6: memref<32x32xf32, #tpu.memory_space<vmem>>, %arg7: memref<32x1xf32, #tpu.memory_space<vmem>>, %arg8: memref<8x32xf32, #tpu.memory_space<vmem>>, %arg9: memref<8x1xf32, #tpu.memory_space<vmem>>, %arg10: memref<8x128xf32, #tpu.memory_space<vmem>>) attributes {dimension_semantics = [#tpu.dimension_semantics<parallel>], iteration_bounds = array<i64: 1>, scalar_prefetch = 0 : i64, scratch_operands = 0 : i64, tpu.core_type = #tpu.core_type<tc>, window_params = [{transform_indices = @transform_0, window_bounds = array<i64: 128, 16>}, {pipeline_mode = #tpu.pipeline_mode<synchronous>, transform_indices = @transform_1, window_bounds = array<i64: 32, 16>}, {pipeline_mode = #tpu.pipeline_mode<synchronous>, transform_indices = @transform_2, window_bounds = array<i64: 32, 1>}, {pipeline_mode = #tpu.pipeline_mode<synchronous>, transform_indices = @transform_3, window_bounds = array<i64: 32, 1>}, {pipeline_mode = #tpu.pipeline_mode<synchronous>, transform_indices = @transform_4, window_bounds = array<i64: 32, 1>}, {pipeline_mode = #tpu.pipeline_mode<synchronous>, transform_indices = @transform_5, window_bounds = array<i64: 32, 32>}, {pipeline_mode = #tpu.pipeline_mode<synchronous>, transform_indices = @transform_6, window_bounds = array<i64: 32, 1>}, {pipeline_mode = #tpu.pipeline_mode<synchronous>, transform_indices = @transform_7, window_bounds = array<i64: 8, 32>}, {pipeline_mode = #tpu.pipeline_mode<synchronous>, transform_indices = @transform_8, window_bounds = array<i64: 8, 1>}, {transform_indices = @transform_9, window_bounds = array<i64: 8, 128>}]} {
    %c0 = arith.constant 0 : index
    %c0_0 = arith.constant 0 : index
    %0 = vector.load %arg2[%c0, %c0_0] : memref<32x16xf32, #tpu.memory_space<vmem>>, vector<32x16xf32>
    %c0_1 = arith.constant 0 : index
    %c0_2 = arith.constant 0 : index
    %1 = vector.load %arg1[%c0_1, %c0_2] : memref<128x16xf32, #tpu.memory_space<vmem>>, vector<128x16xf32>
    %cst = arith.constant dense<0.000000e+00> : vector<32x128xf32>
    %2 = tpu.matmul %0, %1, %cst {dimension_numbers = #tpu.dot_dimension_numbers<[1], [1], [0], [0], [0, 0, 1, 0], [], []>} : vector<32x16xf32>, vector<128x16xf32>, vector<32x128xf32> -> vector<32x128xf32>
    %c0_3 = arith.constant 0 : index
    %c0_4 = arith.constant 0 : index
    %3 = vector.load %arg3[%c0_3, %c0_4] : memref<32x1xf32, #tpu.memory_space<vmem>>, vector<32x1xf32>
    %4 = vector.broadcast %3 : vector<32x1xf32> to vector<32x128xf32>
    %5 = arith.addf %2, %4 : vector<32x128xf32>
    %cst_5 = arith.constant dense<0.000000e+00> : vector<128xf32>
    %6 = vector.multi_reduction <add>, %5, %cst_5 [0] : vector<32x128xf32> to vector<128xf32>
    %7 = vector.shape_cast %6 : vector<128xf32> to vector<1x128xf32>
    %cst_6 = arith.constant 3.200000e+01 : f32
    %8 = vector.broadcast %cst_6 : f32 to vector<1x128xf32>
    %9 = arith.divf %7, %8 : vector<1x128xf32>
    %10 = vector.broadcast %9 : vector<1x128xf32> to vector<32x128xf32>
    %11 = arith.subf %5, %10 : vector<32x128xf32>
    %12 = arith.mulf %11, %11 : vector<32x128xf32>
    %cst_7 = arith.constant dense<0.000000e+00> : vector<128xf32>
    %13 = vector.multi_reduction <add>, %12, %cst_7 [0] : vector<32x128xf32> to vector<128xf32>
    %14 = vector.shape_cast %13 : vector<128xf32> to vector<1x128xf32>
    %cst_8 = arith.constant 3.200000e+01 : f32
    %15 = vector.broadcast %cst_8 : f32 to vector<1x128xf32>
    %16 = arith.divf %14, %15 : vector<1x128xf32>
    %17 = vector.broadcast %9 : vector<1x128xf32> to vector<32x128xf32>
    %18 = arith.subf %5, %17 : vector<32x128xf32>
    %cst_9 = arith.constant 9.99999974E-6 : f32
    %19 = vector.broadcast %cst_9 : f32 to vector<1x128xf32>
    %20 = arith.addf %16, %19 : vector<1x128xf32>
    %21 = math.rsqrt %20 : vector<1x128xf32>
    %22 = vector.broadcast %21 : vector<1x128xf32> to vector<32x128xf32>
    %23 = arith.mulf %18, %22 : vector<32x128xf32>
    %c0_10 = arith.constant 0 : index
    %c0_11 = arith.constant 0 : index
    %24 = vector.load %arg4[%c0_10, %c0_11] : memref<32x1xf32, #tpu.memory_space<vmem>>, vector<32x1xf32>
    %25 = vector.broadcast %24 : vector<32x1xf32> to vector<32x128xf32>
    %26 = arith.mulf %23, %25 : vector<32x128xf32>
    %c0_12 = arith.constant 0 : index
    %c0_13 = arith.constant 0 : index
    %27 = vector.load %arg5[%c0_12, %c0_13] : memref<32x1xf32, #tpu.memory_space<vmem>>, vector<32x1xf32>
    %28 = vector.broadcast %27 : vector<32x1xf32> to vector<32x128xf32>
    %29 = arith.addf %26, %28 : vector<32x128xf32>
    %cst_14 = arith.constant 0.000000e+00 : f32
    %30 = vector.broadcast %cst_14 : f32 to vector<32x128xf32>
    %31 = arith.maximumf %29, %30 : vector<32x128xf32>
    %c0_15 = arith.constant 0 : index
    %c0_16 = arith.constant 0 : index
    %32 = vector.load %arg6[%c0_15, %c0_16] : memref<32x32xf32, #tpu.memory_space<vmem>>, vector<32x32xf32>
    %cst_17 = arith.constant dense<0.000000e+00> : vector<32x128xf32>
    %33 = tpu.matmul %32, %31, %cst_17 {dimension_numbers = #tpu.dot_dimension_numbers<[1], [0], [0], [1], [0, 0, 1, 1], [], []>} : vector<32x32xf32>, vector<32x128xf32>, vector<32x128xf32> -> vector<32x128xf32>
    %c0_18 = arith.constant 0 : index
    %c0_19 = arith.constant 0 : index
    %34 = vector.load %arg7[%c0_18, %c0_19] : memref<32x1xf32, #tpu.memory_space<vmem>>, vector<32x1xf32>
    %35 = vector.broadcast %34 : vector<32x1xf32> to vector<32x128xf32>
    %36 = arith.addf %33, %35 : vector<32x128xf32>
    %cst_20 = arith.constant 0.000000e+00 : f32
    %37 = vector.broadcast %cst_20 : f32 to vector<32x128xf32>
    %38 = arith.maximumf %36, %37 : vector<32x128xf32>
    %c0_21 = arith.constant 0 : index
    %c0_22 = arith.constant 0 : index
    %39 = vector.load %arg8[%c0_21, %c0_22] : memref<8x32xf32, #tpu.memory_space<vmem>>, vector<8x32xf32>
    %cst_23 = arith.constant dense<0.000000e+00> : vector<8x128xf32>
    %40 = tpu.matmul %39, %38, %cst_23 {dimension_numbers = #tpu.dot_dimension_numbers<[1], [0], [0], [1], [0, 0, 1, 1], [], []>} : vector<8x32xf32>, vector<32x128xf32>, vector<8x128xf32> -> vector<8x128xf32>
    %c0_24 = arith.constant 0 : index
    %c0_25 = arith.constant 0 : index
    %41 = vector.load %arg9[%c0_24, %c0_25] : memref<8x1xf32, #tpu.memory_space<vmem>>, vector<8x1xf32>
    %42 = vector.broadcast %41 : vector<8x1xf32> to vector<8x128xf32>
    %43 = arith.addf %40, %42 : vector<8x128xf32>
    %44 = tpu.iota {dimensions = array<i32: 0>} : vector<8x128xi32>
    %45 = math.tanh %43 : vector<8x128xf32>
    %cst_26 = arith.constant 1.000000e+00 : f32
    %46 = vector.broadcast %cst_26 : f32 to vector<8x128xf32>
    %47 = arith.addf %45, %46 : vector<8x128xf32>
    %cst_27 = arith.constant 6.000000e+00 : f32
    %48 = vector.broadcast %cst_27 : f32 to vector<8x128xf32>
    %49 = arith.mulf %48, %47 : vector<8x128xf32>
    %cst_28 = arith.constant -1.000000e+01 : f32
    %50 = vector.broadcast %cst_28 : f32 to vector<8x128xf32>
    %51 = arith.addf %50, %49 : vector<8x128xf32>
    %c4_i32 = arith.constant 4 : i32
    %52 = vector.broadcast %c4_i32 : i32 to vector<8x128xi32>
    %53 = arith.cmpi sge, %44, %52 : vector<8x128xi32>
    %54 = math.exp %51 : vector<8x128xf32>
    %55 = arith.select %53, %54, %43 : vector<8x128xi1>, vector<8x128xf32>
    %c0_29 = arith.constant 0 : index
    %c0_30 = arith.constant 0 : index
    %56 = vector.load %arg10[%c0_29, %c0_30] : memref<8x128xf32, #tpu.memory_space<vmem>>, vector<8x128xf32>
    tpu.vector_store %arg10[%c0_29, %c0_30], %55 {strides = array<i32>} : memref<8x128xf32, #tpu.memory_space<vmem>>, vector<8x128xf32>,
    return
  }
  func.func @transform_0(%arg0: i32) -> (i32, i32) {
    %c0_i32 = arith.constant 0 : i32
    %c0_i32_0 = arith.constant 0 : i32
    return %arg0, %c0_i32 : i32, i32
  }
  func.func @transform_1(%arg0: i32) -> (i32, i32) {
    %c0_i32 = arith.constant 0 : i32
    %c0_i32_0 = arith.constant 0 : i32
    %c0_i32_1 = arith.constant 0 : i32
    return %c0_i32, %c0_i32_0 : i32, i32
  }
  func.func @transform_2(%arg0: i32) -> (i32, i32) {
    %c0_i32 = arith.constant 0 : i32
    %c0_i32_0 = arith.constant 0 : i32
    %c0_i32_1 = arith.constant 0 : i32
    return %c0_i32, %c0_i32_0 : i32, i32
  }
  func.func @transform_3(%arg0: i32) -> (i32, i32) {
    %c0_i32 = arith.constant 0 : i32
    %c0_i32_0 = arith.constant 0 : i32
    %c0_i32_1 = arith.constant 0 : i32
    return %c0_i32, %c0_i32_0 : i32, i32
  }
  func.func @transform_4(%arg0: i32) -> (i32, i32) {
    %c0_i32 = arith.constant 0 : i32
    %c0_i32_0 = arith.constant 0 : i32
    %c0_i32_1 = arith.constant 0 : i32
    return %c0_i32, %c0_i32_0 : i32, i32
  }
  func.func @transform_5(%arg0: i32) -> (i32, i32) {
    %c0_i32 = arith.constant 0 : i32
    %c0_i32_0 = arith.constant 0 : i32
    %c0_i32_1 = arith.constant 0 : i32
    return %c0_i32, %c0_i32_0 : i32, i32
  }
  func.func @transform_6(%arg0: i32) -> (i32, i32) {
    %c0_i32 = arith.constant 0 : i32
    %c0_i32_0 = arith.constant 0 : i32
    %c0_i32_1 = arith.constant 0 : i32
    return %c0_i32, %c0_i32_0 : i32, i32
  }
  func.func @transform_7(%arg0: i32) -> (i32, i32) {
    %c0_i32 = arith.constant 0 : i32
    %c0_i32_0 = arith.constant 0 : i32
    %c0_i32_1 = arith.constant 0 : i32
    return %c0_i32, %c0_i32_0 : i32, i32
  }
  func.func @transform_8(%arg0: i32) -> (i32, i32) {
    %c0_i32 = arith.constant 0 : i32
    %c0_i32_0 = arith.constant 0 : i32
    %c0_i32_1 = arith.constant 0 : i32
    return %c0_i32, %c0_i32_0 : i32, i32
  }
  func.func @transform_9(%arg0: i32) -> (i32, i32) {
    %c0_i32 = arith.constant 0 : i32
    %c0_i32_0 = arith.constant 0 : i32
    return %c0_i32, %arg0 : i32, i32
  }
}

</mosaic_0001>

<bundles_post_ra>
// kernel: actor_forward.1
= control target key start
LH: loop header
LB: loop body
LE: loop exit
PB: predicated region body
PF: predicated region fallthrough
CT: control target
= control target key end

     0   :  { %vm76_vm0 = vcmask 130048   ;;  %v449_v5 = vmov 0   ;;  %v450_v40 = vmov 32.0   ;;  %vm304_vm5 = vcmask 261120   ;;  %s671_s0 = inlined_call_operand.vmem [shape: f32[128,16], index: 0, kind: input, shape index: {}]   ;;  %s672_s2 = inlined_call_operand.vmem [shape: f32[32,1], index: 2, kind: input, shape index: {}]   ;;  %s673_s4 = inlined_call_operand.vmem [shape: f32[32,1], index: 4, kind: input, shape index: {}]   ;;  %s674_s3 = inlined_call_operand.vmem [shape: f32[32,1], index: 3, kind: input, shape index: {}]   ;;  %s675_s6 = inlined_call_operand.vmem [shape: f32[32,1], index: 6, kind: input, shape index: {}]   ;;  %s676_s8 = inlined_call_operand.vmem [shape: f32[8,1], index: 8, kind: input, shape index: {}]   ;;  %s677_s1 = inlined_call_operand.vmem [shape: f32[32,16], index: 1, kind: input, shape index: {}]   ;;  %s678_s5 = inlined_call_operand.vmem [shape: f32[32,32], index: 5, kind: input, shape index: {}]   ;;  %s679_s7 = inlined_call_operand.vmem [shape: f32[8,32], index: 7, kind: input, shape index: {}]   ;;  %s680_s9 = inlined_call_operand.vmem [shape: f32[8,128], index: 9, kind: output, shape index: {}]  }
   0x1   :  { %v51_v0 = vld [vmem:[%s671_s0 + $0x78] sm:$0xff]  ;;  %v50_v1 = vld [vmem:[%s671_s0 + $0x70] sm:$0xff]  ;;  %v49_v2 = vld [vmem:[%s671_s0 + $0x68] sm:$0xff]  ;;  %438 = vset.pattern.permute.xlu0 %v449_v5  ;;  %439 = vset.pattern.permute.xlu1 %v449_v5  ;;  %441 = vrcp.f32 %v450_v40 }
   0x2   :  { %420 = vmatpush.xpose.msk.msra.mxu3 %vm76_vm0, %v51_v0  ;;  %395 = vmatpush.xpose.msk.msra.mxu0 %vm76_vm0, %v51_v0  ;;  %v52_v3 = vld [vmem:[%s672_s2] sm:$0xff]  ;;  %v54_v6 = vld [vmem:[%s672_s2 + $0x10] sm:$0xff]  ;;  %v47_v7 = vld [vmem:[%s671_s0 + $0x58] sm:$0xff] }
   0x3   :  { %v48_v4 = vld [vmem:[%s671_s0 + $0x60] sm:$0xff]  ;;  %58 = vperm.xlu0 %438, %v52_v3   ;;  %440 = vset.pattern.permute.xlu2 %v449_v5  ;;  %v53_v8 = vld [vmem:[%s672_s2 + $0x8] sm:$0xff]  ;;  %v46_v9 = vld [vmem:[%s671_s0 + $0x50] sm:$0xff] }
   0x4   :  { %68 = vperm.xlu1 %439, %v54_v6   ;;  %v55_v10 = vld [vmem:[%s672_s2 + $0x18] sm:$0xff]  ;;  %v45_v11 = vld [vmem:[%s671_s0 + $0x48] sm:$0xff]  ;;  %v44_v13 = vld [vmem:[%s671_s0 + $0x40] sm:$0xff] }
   0x5   :  { %v247_v12 = vld [vmem:[%s673_s4 + $0x18] sm:$0xff]  ;;  %v217_v15 = vld [vmem:[%s674_s3 + $0x8] sm:$0xff]  ;;  %v216_v16 = vld [vmem:[%s674_s3] sm:$0xff] }
   0x6   :  { %421 = vmatpush.xpose.msk.msra.mxu3 %vm76_vm0, %v50_v1  ;;  %396 = vmatpush.xpose.msk.msra.mxu0 %vm76_vm0, %v50_v1  ;;  %v43_v14 = vld [vmem:[%s671_s0 + $0x38] sm:$0xff]  ;;  %v42_v17 = vld [vmem:[%s671_s0 + $0x30] sm:$0xff]  ;;  %v41_v18 = vld [vmem:[%s671_s0 + $0x28] sm:$0xff] }
   0x7   :  { %v245_v19 = vld [vmem:[%s673_s4 + $0x8] sm:$0xff]  ;;  %v283_v20 = vld [vmem:[%s675_s6 + $0x18] sm:$0xff]  ;;  %v40_v21 = vld [vmem:[%s671_s0 + $0x20] sm:$0xff]  ;;  %v442_v45 = vpop.eup %441 }
   0x8   :  { %v39_v22 = vld [vmem:[%s671_s0 + $0x18] sm:$0xff]  ;;  %v282_v23 = vld [vmem:[%s675_s6 + $0x10] sm:$0xff]  ;;  %v280_v24 = vld [vmem:[%s675_s6] sm:$0xff]  ;;  %v176_v49 = vmul.f32 32.0, %v442_v45  ;;  %vm180_vm1 = vweird.f32 %v442_v45 }
   0x9   :  { %v219_v25 = vld [vmem:[%s674_s3 + $0x18] sm:$0xff]  ;;  %v38_v26 = vld [vmem:[%s671_s0 + $0x10] sm:$0xff]  ;;  %v37_v27 = vld [vmem:[%s671_s0 + $0x8] sm:$0xff] }
   0xa   :  { %422 = vmatpush.xpose.msk.msra.mxu3 %vm76_vm0, %v49_v2  ;;  %397 = vmatpush.xpose.msk.msra.mxu0 %vm76_vm0, %v49_v2  ;;  %v351_v28 = vld [vmem:[%s676_s8] sm:$0xff]  ;;  %v218_v29 = vld [vmem:[%s674_s3 + $0x10] sm:$0xff]  ;;  %v33_v31 = vld [vmem:[%s677_s1 + $0x8] sm:$0xff]  ;;  %v177_v55 = vsub.f32 1.0, %v176_v49 }
   0xb   :  { %63 = vperm.xlu0 %438, %v53_v8   ;;  %237 = vperm.xlu2 %440, %v219_v25   ;;  %v36_v30 = vld [vmem:[%s671_s0] sm:$0xff]  ;;  %v246_v33 = vld [vmem:[%s673_s4 + $0x10] sm:$0xff]  ;;  %v35_v35 = vld [vmem:[%s677_s1 + $0x18] sm:$0xff] }
   0xc   :  { %73 = vperm.xlu1 %439, %v55_v10   ;;  %v32_v32 = vld [vmem:[%s677_s1] sm:$0xff]  ;;  %v34_v34 = vld [vmem:[%s677_s1 + $0x10] sm:$0xff]  ;;  %v281_v37 = vld [vmem:[%s675_s6 + $0x8] sm:$0xff]  ;;  %v178_v58 = vmul.f32 %v442_v45, %v177_v55 }
   0xd   :  { %v244_v36 = vld [vmem:[%s673_s4] sm:$0xff]  ;;  %v278_v55 = vld [vmem:[%s678_s5 + $0x10] sm:$0xff] }
   0xe   :  { %423 = vmatpush.xpose.msk.msra.mxu3 %vm76_vm0, %v48_v4  ;;  %398 = vmatpush.xpose.msk.msra.mxu0 %vm76_vm0, %v48_v4  ;;  %v179_v61 = vadd.f32 %v442_v45, %v178_v58 }
  0x10   :  { %v181_v0 = vsel %vm180_vm1, %v442_v45, %v179_v61 }
  0x12   :  { %424 = vmatpush.xpose.msk.msra.mxu3 %vm76_vm0, %v47_v7  ;;  %399 = vmatpush.xpose.msk.msra.mxu0 %vm76_vm0, %v47_v7 }
  0x13   :  { %265 = vperm.xlu0 %438, %v247_v12   ;;  %232 = vperm.xlu2 %440, %v218_v29  }
  0x14   :  { %227 = vperm.xlu1 %439, %v217_v15  }
  0x16   :  { %425 = vmatpush.xpose.msk.msra.mxu3 %vm76_vm0, %v46_v9  ;;  %400 = vmatpush.xpose.msk.msra.mxu0 %vm76_vm0, %v46_v9 }
  0x1a   :  { %426 = vmatpush.xpose.msk.msra.mxu3 %vm76_vm0, %v45_v11  ;;  %401 = vmatpush.xpose.msk.msra.mxu0 %vm76_vm0, %v45_v11 }
  0x1b   :  { %222 = vperm.xlu0 %438, %v216_v16   ;;  %260 = vperm.xlu2 %440, %v246_v33  }
  0x1c   :  { %255 = vperm.xlu1 %439, %v245_v19  }
  0x1e   :  { %427 = vmatpush.xpose.msk.msra.mxu3 %vm76_vm0, %v44_v13  ;;  %402 = vmatpush.xpose.msk.msra.mxu0 %vm76_vm0, %v44_v13 }
  0x22   :  { %428 = vmatpush.xpose.msk.msra.mxu3 %vm76_vm0, %v43_v14  ;;  %403 = vmatpush.xpose.msk.msra.mxu0 %vm76_vm0, %v43_v14 }
  0x23   :  { %301 = vperm.xlu0 %438, %v283_v20   ;;  %250 = vperm.xlu2 %440, %v244_v36  }
  0x24   :  { %296 = vperm.xlu1 %439, %v282_v23  }
  0x26   :  { %429 = vmatpush.xpose.msk.msra.mxu3 %vm76_vm0, %v42_v17  ;;  %404 = vmatpush.xpose.msk.msra.mxu0 %vm76_vm0, %v42_v17 }
  0x2a   :  { %430 = vmatpush.xpose.msk.msra.mxu3 %vm76_vm0, %v41_v18  ;;  %405 = vmatpush.xpose.msk.msra.mxu0 %vm76_vm0, %v41_v18 }
  0x2b   :  { %286 = vperm.xlu0 %438, %v280_v24   ;;  %291 = vperm.xlu2 %440, %v281_v37  }
  0x2c   :  { %354 = vperm.xlu1 %439, %v351_v28  }
  0x2e   :  { %431 = vmatpush.xpose.msk.msra.mxu3 %vm76_vm0, %v40_v21  ;;  %406 = vmatpush.xpose.msk.msra.mxu0 %vm76_vm0, %v40_v21 }
  0x32   :  { %432 = vmatpush.xpose.msk.msra.mxu3 %vm76_vm0, %v39_v22  ;;  %407 = vmatpush.xpose.msk.msra.mxu0 %vm76_vm0, %v39_v22 }
  0x36   :  { %433 = vmatpush.xpose.msk.msra.mxu3 %vm76_vm0, %v38_v26  ;;  %408 = vmatpush.xpose.msk.msra.mxu0 %vm76_vm0, %v38_v26 }
  0x3a   :  { %434 = vmatpush.xpose.msk.msra.mxu3 %vm76_vm0, %v37_v27  ;;  %409 = vmatpush.xpose.msk.msra.mxu0 %vm76_vm0, %v37_v27 }
  0x3e   :  { %435 = vmatpush.xpose.msk.msra.mxu3 %vm76_vm0, %v36_v30  ;;  %410 = vmatpush.xpose.msk.msra.mxu0 %vm76_vm0, %v36_v30 }
  0x41   :  { %412 = vmatmul.msk.f32.vlgmr.msra.gmra.mxu3 %vm76_vm0, %v33_v31  ;;  %411 = vmatmul.msk.f32.vlgmr.msra.gmra.mxu0 %vm76_vm0, %v32_v32 }
  0x49   :  { %413 = vmatmul.msk.f32.gmra.mxu3 %vm76_vm0, %v34_v34 }
  0x51   :  { %414 = vmatmul.msk.f32.gmra.mxu3 %vm76_vm0, %v35_v35 }
  0x65   :  { %v238_v20 = vpop.permute.xlu2 %237 }
  0x6d   :  { %v233_v23 = vpop.permute.xlu2 %232 }
  0x75   :  { %v59_v38 = vpop.permute.xlu0 %58  ;;  %v261_v32 = vpop.permute.xlu2 %260 }
  0x76   :  { %v69_v41 = vpop.permute.xlu1 %68 }
  0x7d   :  { %v64_v44 = vpop.permute.xlu0 %63 }
  0x7e   :  { %v74_v51 = vpop.permute.xlu1 %73 }
  0x85   :  { %v266_v27 = vpop.permute.xlu0 %265 }
  0x86   :  { %v228_v29 = vpop.permute.xlu1 %227 }
  0x8e   :  { %v256_v45 = vpop.permute.xlu1 %255 }
  0x96   :  { %v297_v61 = vpop.permute.xlu1 %296 }
  0xbe   :  { %v154_v42 = vpop.f32.mrf.mxu0 }
  0xbf   :  { %v155_v46 = vadd.f32 %v154_v42, %v59_v38 }
  0xc4   :  { %v157_v39 = vpop.f32.mrf.mxu3 }
  0xc5   :  { %v158_v47 = vadd.f32 %v157_v39, %v64_v44 }
  0xc7   :  { %v166_v50 = vadd.f32 %v158_v47, %v155_v46 }
  0xcc   :  { %v160_v43 = vpop.f32.mrf.mxu3 }
  0xcd   :  { %v161_v48 = vadd.f32 %v160_v43, %v69_v41  ;;  %v223_v41 = vpop.permute.xlu0 %222 }
  0xcf   :  { %v167_v53 = vadd.f32 %v166_v50, %v161_v48 }
  0xd4   :  { %v163_v52 = vpop.f32.mrf.mxu3 }
  0xd5   :  { %v164_v54 = vadd.f32 %v163_v52, %v74_v51 }
  0xd7   :  { %v168_v56 = vadd.f32 %v167_v53, %v164_v54  ;;  %v276_v53 = vld [vmem:[%s678_s5] sm:$0xff] }
  0xd9   :  { %v169_v57 = vrot.slane %v168_v56, 4 }
  0xdb   :  { %v170_v59 = vadd.f32 %v169_v57, %v168_v56  ;;  %v279_v56 = vld [vmem:[%s678_s5 + $0x18] sm:$0xff] }
  0xdd   :  { %v171_v60 = vrot.slane %v170_v59, 2 }
  0xdf   :  { %v172_v62 = vadd.f32 %v171_v60, %v170_v59  ;;  %v302_v60 = vpop.permute.xlu0 %301 }
  0xe1   :  { %v173_v63 = vrot.slane %v172_v62, 1 }
  0xe3   :  { %v174_v1 = vadd.f32 %v173_v63, %v172_v62 }
  0xe5   :  { %v182_v2 = vmul.f32 %v181_v0, %v174_v1 }
  0xe7   :  { %v183_v3 = vsub.f32 %v155_v46, %v182_v2  ;;  %v184_v4 = vsub.f32 %v158_v47, %v182_v2  ;;  %v185_v5 = vsub.f32 %v161_v48, %v182_v2  ;;  %v186_v6 = vsub.f32 %v164_v54, %v182_v2  ;;  %v251_v48 = vpop.permute.xlu2 %250  ;;  %v277_v54 = vld [vmem:[%s678_s5 + $0x8] sm:$0xff] }
  0xe9   :  { %v187_v7 = vmul.f32 %v183_v3, %v183_v3  ;;  %v188_v8 = vmul.f32 %v184_v4, %v184_v4  ;;  %v189_v9 = vmul.f32 %v185_v5, %v185_v5  ;;  %v190_v11 = vmul.f32 %v186_v6, %v186_v6 }
  0xeb   :  { %v191_v10 = vadd.f32 %v188_v8, %v187_v7 }
  0xed   :  { %v192_v12 = vadd.f32 %v191_v10, %v189_v9  ;;  %v350_v9 = vld [vmem:[%s679_s7] sm:$0xff]  ;;  %v355_v10 = vpop.permute.xlu1 %354 }
  0xef   :  { %v193_v13 = vadd.f32 %v192_v12, %v190_v11  ;;  %v292_v1 = vpop.permute.xlu2 %291 }
  0xf1   :  { %v194_v14 = vrot.slane %v193_v13, 4 }
  0xf3   :  { %v195_v15 = vadd.f32 %v194_v14, %v193_v13 }
  0xf5   :  { %v196_v16 = vrot.slane %v195_v15, 2 }
  0xf7   :  { %v197_v17 = vadd.f32 %v196_v16, %v195_v15  ;;  %v380_v16 = vlaneseq }
  0xf9   :  { %v198_v18 = vrot.slane %v197_v17, 1 }
  0xfb   :  { %v199_v19 = vadd.f32 %v198_v18, %v197_v17 }
  0xfd   :  { %v200_v21 = vmul.f32 %v199_v19, %v181_v0  ;;  %v381_v19 = vshrl.u32 %v380_v16, 7 }
  0xff   :  { %v201_v22 = vadd.f32 1e-05, %v200_v21  ;;  %vm386_vm6 = vcmp.ge.s32.totalorder %v381_v19, 4 }
 0x101   :  { %443 = vrsqrt.f32 %v201_v22  ;;  %vm208_vm3 = vweird.f32 %v201_v22 }
 0x107   :  { %v444_v24 = vpop.eup %443 }
 0x108   :  { %v203_v25 = vmul.f32 %v444_v24, %v201_v22  ;;  %vm209_vm2 = vweird.f32 %v444_v24 }
 0x109   :  { %vm210_vm4 = vmor %vm208_vm3, %vm209_vm2 }
 0x10a   :  { %v204_v26 = vmul.f32 %v444_v24, %v203_v25 }
 0x10c   :  { %v205_v28 = vmul.f32 0.5, %v204_v26 }
 0x10e   :  { %v206_v30 = vsub.f32 1.5, %v205_v28 }
 0x110   :  { %v207_v31 = vmul.f32 %v444_v24, %v206_v30 }
 0x112   :  { %v211_v33 = vsel %vm210_vm4, %v444_v24, %v207_v31 }
 0x113   :  { %v215_v34 = vmul.f32 %v211_v33, %v186_v6  ;;  %v214_v35 = vmul.f32 %v211_v33, %v185_v5  ;;  %v212_v36 = vmul.f32 %v211_v33, %v183_v3  ;;  %v213_v37 = vmul.f32 %v211_v33, %v184_v4  ;;  %v287_v4 = vpop.permute.xlu0 %286 }
 0x115   :  { %v243_v38 = vmul.f32 %v238_v20, %v215_v34  ;;  %v242_v39 = vmul.f32 %v233_v23, %v214_v35  ;;  %v241_v40 = vmul.f32 %v228_v29, %v213_v37  ;;  %v240_v43 = vmul.f32 %v223_v41, %v212_v36 }
 0x117   :  { %v270_v42 = vadd.f32 %v261_v32, %v242_v39  ;;  %v271_v44 = vadd.f32 %v266_v27, %v243_v38  ;;  %v269_v47 = vadd.f32 %v256_v45, %v241_v40  ;;  %v268_v50 = vadd.f32 %v251_v48, %v240_v43 }
 0x119   :  { %v275_v46 = vmax.f32 %v271_v44, 0.0  ;;  %v274_v49 = vmax.f32 %v270_v42, 0.0  ;;  %v273_v51 = vmax.f32 %v269_v47, 0.0  ;;  %v272_v52 = vmax.f32 %v268_v50, 0.0 }
 0x11b   :  { %329 = vmatpush.msra.mxu1 %v275_v46 }
 0x11d   :  { %330 = vmatpush.msra.mxu1 %v274_v49 }
 0x11f   :  { %331 = vmatpush.msra.mxu1 %v273_v51 }
 0x121   :  { %332 = vmatpush.msra.mxu1 %v272_v52 }
 0x122   :  { %415 = vmatmul.msk.f32.vlgmr.msra.gmra.mxu1 %vm304_vm5, %v276_v53 }
 0x12a   :  { %416 = vmatmul.msk.f32.gmra.mxu1 %vm304_vm5, %v277_v54 }
 0x132   :  { %417 = vmatmul.msk.f32.gmra.mxu1 %vm304_vm5, %v278_v55 }
 0x13a   :  { %418 = vmatmul.msk.f32.gmra.mxu1 %vm304_vm5, %v279_v56 }
 0x19f   :  { %v334_v57 = vpop.f32.mrf.mxu1 }
 0x1a0   :  { %v335_v5 = vadd.f32 %v334_v57, %v287_v4 }
 0x1a2   :  { %v346_v8 = vmax.f32 %v335_v5, 0.0 }
 0x1a7   :  { %v337_v58 = vpop.f32.mrf.mxu1 }
 0x1a8   :  { %v338_v2 = vadd.f32 %v337_v58, %v292_v1 }
 0x1aa   :  { %v347_v7 = vmax.f32 %v338_v2, 0.0 }
 0x1af   :  { %v340_v59 = vpop.f32.mrf.mxu1 }
 0x1b0   :  { %v341_v63 = vadd.f32 %v340_v59, %v297_v61 }
 0x1b2   :  { %v348_v6 = vmax.f32 %v341_v63, 0.0 }
 0x1b7   :  { %v343_v62 = vpop.f32.mrf.mxu1 }
 0x1b8   :  { %v344_v0 = vadd.f32 %v343_v62, %v302_v60 }
 0x1ba   :  { %v349_v3 = vmax.f32 %v344_v0, 0.0 }
 0x1bc   :  { %372 = vmatpush.msra.mxu2 %v349_v3 }
 0x1be   :  { %373 = vmatpush.msra.mxu2 %v348_v6 }
 0x1c0   :  { %374 = vmatpush.msra.mxu2 %v347_v7 }
 0x1c2   :  { %375 = vmatpush.msra.mxu2 %v346_v8 }
 0x1c3   :  { %419 = vmatmul.msk.f32.vlgmr.msra.gmra.mxu2 %vm304_vm5, %v350_v9 }
 0x246   :  { %v377_v11 = vpop.f32.mrf.mxu2 }
 0x247   :  { %v378_v12 = vadd.f32 %v377_v11, %v355_v10 }
 0x249   :  { %445 = vtanh.f32 %v378_v12 }
 0x24f   :  { %v446_v13 = vpop.eup %445 }
 0x250   :  { %v383_v14 = vadd.f32 1.0, %v446_v13 }
 0x252   :  { %v384_v15 = vmul.f32 6.0, %v383_v14 }
 0x254   :  { %v385_v17 = vadd.f32 -10.0, %v384_v15 }
 0x256   :  { %v387_v18 = vmul.f32 1.442695, %v385_v17 }
 0x258   :  { %447 = vpow2.f32 %v387_v18 }
 0x25e   :  { %v448_v20 = vpop.eup %447 }
 0x25f   :  { %v389_v21 = vsel %vm386_vm6, %v448_v20, %v378_v12 }
 0x260   :  { %390 = vst [vmem:[%s680_s9] sm:$0xff] %v389_v21 }

</bundles_post_ra>
